<compile_context>
chip_gen: v7x
topology: tpu7x:2x2x1
jax: 0.10.0
libtpu: 0.0.40
codegen_flags: <defaults>
</compile_context>

<pallas_src>
import functools

import jax
import jax.numpy as jnp
from jax.experimental import pallas as pl
from jax.experimental.pallas import tpu as pltpu


def _round_up(v, m):
    return -(-v // m) * m


# ------------------------------ Pallas kernel ------------------------------ #
def _mirror_conv_kernel(x_ref, w_ref, b_ref, o_ref, *, k, w8, h):
    """One (batch, output-depth, kd-tap) grid step.

    x_ref: (Hp*W8, Ckp) bf16   channels-last input plane at depth d + kd,
                               kw taps pre-folded into the channel axis.
    w_ref: (k, Ckp, Cout) bf16 weights for this kd; one (Ckp, Cout) slab per kh.
    b_ref: (1, Cout)      f32  conv bias.
    o_ref: (H*W8, Cout)   f32  output plane at depth d; revisited across kd.
    """
    kd = pl.program_id(2)

    @pl.when(kd == 0)
    def _init():
        # Initialize the resident output block with the bias.
        o_ref[...] = jnp.broadcast_to(b_ref[...], o_ref.shape)

    plane = x_ref[...]                              # (Hp*W8, Ckp) bf16
    acc = None
    for kh in range(k):                             # static unrolled loop
        # Rows [kh*W8, kh*W8 + H*W8): input rows h+kh for every output row h.
        # Offset is a multiple of 16 -> sublane-aligned, no relayout.
        lhs = plane[kh * w8:(kh + h) * w8, :]       # (H*W8, Ckp) bf16
        part = jnp.dot(lhs, w_ref[kh],
                       preferred_element_type=jnp.float32)   # MXU, f32 acc
        acc = part if acc is None else acc + part
    o_ref[...] += acc


# ------------------------------ forward pass ------------------------------- #
def mirror_conv_forward(x, weight, bias, kernel_size):
    """x: (N, Cin, D, H, W) f32; weight: (Cout, Cin, k, k, k); bias: (Cout,)."""
    assert kernel_size % 2 == 1 and kernel_size >= 3
    N, Cin, D, H, W = x.shape
    Cout = weight.shape[0]
    k = kernel_size
    pad = (k - 1) // 2
    # torch flip+cat padding == "symmetric" only when pad <= each spatial dim.
    assert pad <= min(D, H, W), "mirror padding requires pad <= each spatial dim"

    Dp, Hp = D + 2 * pad, H + 2 * pad
    W8 = _round_up(W, 16)           # row length padded so flattening (H,W)->H*W8
                                    # stays sublane-aligned (bf16 packs 16 rows)
    Ck = Cin * k                    # kw taps folded into channels
    Ckp = _round_up(Ck, 16)         # contraction dim aligned to bf16 sublane pack

    # ---- host glue (all O(input)-sized; the k^3 im2col is gone) ----------- #
    xcl = jnp.transpose(x, (0, 2, 3, 4, 1)).astype(jnp.bfloat16)   # (N,D,H,W,Cin)
    # NOTE: bf16 matmul operands (f32 accumulation) -- deviates from f32 torch.
    xp = jnp.pad(xcl, ((0, 0), (pad, pad), (pad, pad), (pad, pad), (0, 0)),
                 mode="symmetric")                                 # (N,Dp,Hp,Wp,Cin)
    # zero-pad width so every kw-shifted window of length W8 is in range;
    # the extra columns only feed output columns that are sliced off below.
    xp = jnp.pad(xp, ((0, 0), (0, 0), (0, 0), (0, W8 - W), (0, 0)))
    # fold the k width taps into the channel axis: channel c = kw*Cin + cin
    taps = jnp.concatenate([xp[:, :, :, kw:kw + W8, :] for kw in range(k)],
                           axis=-1)                                # (N,Dp,Hp,W8,Ck)
    if Ckp != Ck:
        taps = jnp.pad(taps, ((0, 0), (0, 0), (0, 0), (0, 0), (0, Ckp - Ck)))
    taps = taps.reshape(N, Dp, Hp * W8, Ckp)                       # (N,Dp,Hp*W8,Ckp)

    # weight (Cout,Cin,kd,kh,kw) -> (kd, kh, kw*Cin+cin, Cout), zero-pad to Ckp
    w_arr = jnp.transpose(weight, (2, 3, 4, 1, 0)).reshape(k, k, Ck, Cout)
    if Ckp != Ck:
        w_arr = jnp.pad(w_arr, ((0, 0), (0, 0), (0, Ckp - Ck), (0, 0)))
    w_arr = w_arr.astype(jnp.bfloat16)
    b_arr = bias.reshape(1, Cout).astype(jnp.float32)

    # ---- VMEM budget (<=48 MiB: safe on v7x 64 MiB/TC, v5e/v6e 128 MiB) --- #
    def _lanes(c):
        return _round_up(c, 128)
    in_blk = Hp * W8 * _lanes(Ckp) * 2
    out_blk = H * W8 * _lanes(Cout) * 4
    w_blk = k * _round_up(Ckp, 16) * _lanes(Cout) * 2
    need = 2 * in_blk + 2 * out_blk + 2 * w_blk + (1 << 20)
    vmem_limit = int(min(max(need, 32 << 20), 48 << 20))

    flops = 2 * N * D * k * k * (H * W8) * Ckp * Cout
    bytes_accessed = (N * D * k * Hp * W8 * Ckp * 2     # input reads (kd re-reads)
                      + N * D * H * W8 * Cout * 4       # output write (once)
                      + N * D * k * k * Ckp * Cout * 2) # weight refetch (tiny)

    kernel = functools.partial(_mirror_conv_kernel, k=k, w8=W8, h=H)
    out = pl.pallas_call(
        kernel,
        out_shape=jax.ShapeDtypeStruct((N, D, H * W8, Cout), jnp.float32),
        grid_spec=pltpu.PrefetchScalarGridSpec(
            num_scalar_prefetch=0,
            grid=(N, D, k),
            in_specs=[
                # one (already H/W-padded, kw-folded) input plane at depth d+kd
                pl.BlockSpec((None, None, Hp * W8, Ckp),
                             lambda n, d, t: (n, d + t, 0, 0)),
                # weights for tap kd
                pl.BlockSpec((None, k, Ckp, Cout),
                             lambda n, d, t: (t, 0, 0, 0)),
                pl.BlockSpec((1, Cout), lambda n, d, t: (0, 0)),
            ],
            # same output block across the kd axis -> resident f32 accumulator
            out_specs=pl.BlockSpec((None, None, H * W8, Cout),
                                   lambda n, d, t: (n, d, 0, 0)),
        ),
        compiler_params=pltpu.CompilerParams(
            dimension_semantics=("parallel", "parallel", "arbitrary"),
            vmem_limit_bytes=vmem_limit,
        ),
        cost_estimate=pl.CostEstimate(flops=flops, transcendentals=0,
                                      bytes_accessed=bytes_accessed),
    )(taps, w_arr, b_arr)

    # Drop the width padding and go back to NCDHW (one output-sized XLA copy).
    # TODO(synk): a D-slab halo DMA (pl.Element or manual make_async_copy)
    # would remove the remaining k-fold depth re-reads and per-slice grid
    # overhead; an in-kernel transpose could remove this final output copy.
    # TODO(synk): emit bf16 output here if the downstream network accepts it.
    out = out.reshape(N, D, H, W8, Cout)[:, :, :, :W, :]
    return jnp.transpose(out, (0, 4, 1, 2, 3))


# --------------------------- pure-JAX reference ----------------------------- #
def _reference_mirror_conv(x, weight, bias, kernel_size):
    pad = (kernel_size - 1) // 2
    img = x
    for axis in (2, 3, 4):
        n = img.shape[axis]
        up = jnp.flip(jax.lax.slice_in_dim(img, 0, pad, axis=axis), axis=axis)
        down = jnp.flip(jax.lax.slice_in_dim(img, n - pad, n, axis=axis),
                        axis=axis)
        img = jnp.concatenate([up, img, down], axis=axis)
    y = jax.lax.conv_general_dilated(
        img, weight, window_strides=(1, 1, 1), padding="VALID",
        dimension_numbers=("NCDHW", "OIDHW", "NCDHW"))
    return y + bias.reshape(1, -1, 1, 1, 1)


# ----------------------------------- main ----------------------------------- #
if __name__ == "__main__":
    key = jax.random.PRNGKey(0)
    kx, kw, kb = jax.random.split(key, 3)

    N, Cin, D, H, W = 2, 4, 8, 10, 12        # small NCDHW input for Conv3d
    Cout, ksize = 16, 3

    x = jax.random.normal(kx, (N, Cin, D, H, W), dtype=jnp.float32)
    fan_in = Cin * ksize ** 3
    weight = (1.0 / fan_in) ** 0.5 * jax.random.normal(
        kw, (Cout, Cin, ksize, ksize, ksize), dtype=jnp.float32)
    bound = 1.0 / fan_in ** 0.5
    bias = jax.random.uniform(kb, (Cout,), minval=-bound, maxval=bound,
                              dtype=jnp.float32)

    fwd = jax.jit(mirror_conv_forward, static_argnums=(3,))
    out = jax.block_until_ready(fwd(x, weight, bias, ksize))
    assert out.shape == (N, Cout, D, H, W), out.shape

    ref = jax.block_until_ready(_reference_mirror_conv(x, weight, bias, ksize))
    # bf16 matmul operands (f32 accumulation) -> loosen tolerance vs f32 ref.
    assert jnp.allclose(out, ref, rtol=2e-2, atol=2e-2), float(
        jnp.max(jnp.abs(out - ref)))

    print("KERNEL_OK")
</pallas_src>

<mosaic_0001>
module attributes {stable_mosaic.version = 11 : i64} {
  func.func @_mirror_conv_kernel(%arg0: i32, %arg1: i32, %arg2: i32, %arg3: memref<1x1x192x16xbf16, #tpu.memory_space<vmem>>, %arg4: memref<1x3x16x16xbf16, #tpu.memory_space<vmem>>, %arg5: memref<1x16xf32, #tpu.memory_space<vmem>>, %arg6: memref<1x1x160x16xf32, #tpu.memory_space<vmem>>) attributes {dimension_semantics = [#tpu.dimension_semantics<parallel>, #tpu.dimension_semantics<parallel>, #tpu.dimension_semantics<arbitrary>], iteration_bounds = array<i64: 2, 8, 3>, scalar_prefetch = 0 : i64, scratch_operands = 0 : i64, tpu.core_type = #tpu.core_type<tc>, window_params = [{transform_indices = @transform_0, window_bounds = array<i64: 1, 1, 192, 16>}, {transform_indices = @transform_1, window_bounds = array<i64: 1, 3, 16, 16>}, {pipeline_mode = #tpu.pipeline_mode<synchronous>, transform_indices = @transform_2, window_bounds = array<i64: 1, 16>}, {transform_indices = @transform_3, window_bounds = array<i64: 1, 1, 160, 16>}]} {
    %c0_i32 = arith.constant 0 : i32
    %0 = arith.cmpi eq, %arg2, %c0_i32 : i32
    %1 = arith.extui %0 : i1 to i32
    %c0_i32_0 = arith.constant 0 : i32
    %2 = arith.cmpi ne, %1, %c0_i32_0 : i32
    scf.if %2 {
      %c0_24 = arith.constant 0 : index
      %c0_25 = arith.constant 0 : index
      %25 = vector.load %arg5[%c0_24, %c0_25] : memref<1x16xf32, #tpu.memory_space<vmem>>, vector<1x16xf32>
      %26 = vector.shape_cast %25 : vector<1x16xf32> to vector<1x16xf32>
      %27 = vector.broadcast %26 : vector<1x16xf32> to vector<160x16xf32>
      %c0_26 = arith.constant 0 : index
      %c0_27 = arith.constant 0 : index
      %c0_28 = arith.constant 0 : index
      %c0_29 = arith.constant 0 : index
      %28 = vector.load %arg6[%c0_26, %c0_27, %c0_28, %c0_29] : memref<1x1x160x16xf32, #tpu.memory_space<vmem>>, vector<1x1x160x16xf32>
      %29 = vector.shape_cast %28 : vector<1x1x160x16xf32> to vector<160x16xf32>
      %30 = vector.shape_cast %27 : vector<160x16xf32> to vector<1x1x160x16xf32>
      tpu.vector_store %arg6[%c0_26, %c0_27, %c0_28, %c0_29], %30 {strides = array<i32>} : memref<1x1x160x16xf32, #tpu.memory_space<vmem>>, vector<1x1x160x16xf32>,
    } else {
    }
    %c0 = arith.constant 0 : index
    %c0_1 = arith.constant 0 : index
    %c0_2 = arith.constant 0 : index
    %c0_3 = arith.constant 0 : index
    %3 = vector.load %arg3[%c0, %c0_1, %c0_2, %c0_3] : memref<1x1x192x16xbf16, #tpu.memory_space<vmem>>, vector<1x1x192x16xbf16>
    %4 = vector.shape_cast %3 : vector<1x1x192x16xbf16> to vector<192x16xbf16>
    %5 = vector.extract_strided_slice %4 {offsets = [0, 0], sizes = [160, 16], strides = [1, 1]} : vector<192x16xbf16> to vector<160x16xbf16>
    %c0_4 = arith.constant 0 : index
    %c0_5 = arith.constant 0 : index
    %c0_6 = arith.constant 0 : index
    %c0_7 = arith.constant 0 : index
    %6 = vector.load %arg4[%c0_4, %c0_5, %c0_6, %c0_7] : memref<1x3x16x16xbf16, #tpu.memory_space<vmem>>, vector<1x1x16x16xbf16>
    %7 = vector.shape_cast %6 : vector<1x1x16x16xbf16> to vector<16x16xbf16>
    %cst = arith.constant dense<0.000000e+00> : vector<160x16xf32>
    %8 = tpu.matmul %5, %7, %cst {dimension_numbers = #tpu.dot_dimension_numbers<[1], [0], [0], [1], [0, 0, 1, 1], [], []>} : vector<160x16xbf16>, vector<16x16xbf16>, vector<160x16xf32> -> vector<160x16xf32>
    %9 = vector.extract_strided_slice %4 {offsets = [16, 0], sizes = [160, 16], strides = [1, 1]} : vector<192x16xbf16> to vector<160x16xbf16>
    %c0_8 = arith.constant 0 : index
    %c1 = arith.constant 1 : index
    %c0_9 = arith.constant 0 : index
    %c0_10 = arith.constant 0 : index
    %10 = vector.load %arg4[%c0_8, %c1, %c0_9, %c0_10] : memref<1x3x16x16xbf16, #tpu.memory_space<vmem>>, vector<1x1x16x16xbf16>
    %11 = vector.shape_cast %10 : vector<1x1x16x16xbf16> to vector<16x16xbf16>
    %cst_11 = arith.constant dense<0.000000e+00> : vector<160x16xf32>
    %12 = tpu.matmul %9, %11, %cst_11 {dimension_numbers = #tpu.dot_dimension_numbers<[1], [0], [0], [1], [0, 0, 1, 1], [], []>} : vector<160x16xbf16>, vector<16x16xbf16>, vector<160x16xf32> -> vector<160x16xf32>
    %13 = arith.addf %8, %12 : vector<160x16xf32>
    %14 = vector.extract_strided_slice %4 {offsets = [32, 0], sizes = [160, 16], strides = [1, 1]} : vector<192x16xbf16> to vector<160x16xbf16>
    %c0_12 = arith.constant 0 : index
    %c2 = arith.constant 2 : index
    %c0_13 = arith.constant 0 : index
    %c0_14 = arith.constant 0 : index
    %15 = vector.load %arg4[%c0_12, %c2, %c0_13, %c0_14] : memref<1x3x16x16xbf16, #tpu.memory_space<vmem>>, vector<1x1x16x16xbf16>
    %16 = vector.shape_cast %15 : vector<1x1x16x16xbf16> to vector<16x16xbf16>
    %cst_15 = arith.constant dense<0.000000e+00> : vector<160x16xf32>
    %17 = tpu.matmul %14, %16, %cst_15 {dimension_numbers = #tpu.dot_dimension_numbers<[1], [0], [0], [1], [0, 0, 1, 1], [], []>} : vector<160x16xbf16>, vector<16x16xbf16>, vector<160x16xf32> -> vector<160x16xf32>
    %18 = arith.addf %13, %17 : vector<160x16xf32>
    %c0_16 = arith.constant 0 : index
    %c0_17 = arith.constant 0 : index
    %c0_18 = arith.constant 0 : index
    %c0_19 = arith.constant 0 : index
    %19 = vector.load %arg6[%c0_16, %c0_17, %c0_18, %c0_19] : memref<1x1x160x16xf32, #tpu.memory_space<vmem>>, vector<1x1x160x16xf32>
    %20 = vector.shape_cast %19 : vector<1x1x160x16xf32> to vector<160x16xf32>
    %21 = arith.addf %20, %18 : vector<160x16xf32>
    %c0_20 = arith.constant 0 : index
    %c0_21 = arith.constant 0 : index
    %c0_22 = arith.constant 0 : index
    %c0_23 = arith.constant 0 : index
    %22 = vector.load %arg6[%c0_20, %c0_21, %c0_22, %c0_23] : memref<1x1x160x16xf32, #tpu.memory_space<vmem>>, vector<1x1x160x16xf32>
    %23 = vector.shape_cast %22 : vector<1x1x160x16xf32> to vector<160x16xf32>
    %24 = vector.shape_cast %21 : vector<160x16xf32> to vector<1x1x160x16xf32>
    tpu.vector_store %arg6[%c0_20, %c0_21, %c0_22, %c0_23], %24 {strides = array<i32>} : memref<1x1x160x16xf32, #tpu.memory_space<vmem>>, vector<1x1x160x16xf32>,
    return
  }
  func.func @transform_0(%arg0: i32, %arg1: i32, %arg2: i32) -> (i32, i32, i32, i32) {
    %0 = arith.addi %arg1, %arg2 : i32
    %c0_i32 = arith.constant 0 : i32
    %c0_i32_0 = arith.constant 0 : i32
    %c0_i32_1 = arith.constant 0 : i32
    return %arg0, %0, %c0_i32, %c0_i32_0 : i32, i32, i32, i32
  }
  func.func @transform_1(%arg0: i32, %arg1: i32, %arg2: i32) -> (i32, i32, i32, i32) {
    %c0_i32 = arith.constant 0 : i32
    %c0_i32_0 = arith.constant 0 : i32
    %c0_i32_1 = arith.constant 0 : i32
    %c0_i32_2 = arith.constant 0 : i32
    return %arg2, %c0_i32, %c0_i32_0, %c0_i32_1 : i32, i32, i32, i32
  }
  func.func @transform_2(%arg0: i32, %arg1: i32, %arg2: i32) -> (i32, i32) {
    %c0_i32 = arith.constant 0 : i32
    %c0_i32_0 = arith.constant 0 : i32
    %c0_i32_1 = arith.constant 0 : i32
    return %c0_i32, %c0_i32_0 : i32, i32
  }
  func.func @transform_3(%arg0: i32, %arg1: i32, %arg2: i32) -> (i32, i32, i32, i32) {
    %c0_i32 = arith.constant 0 : i32
    %c0_i32_0 = arith.constant 0 : i32
    %c0_i32_1 = arith.constant 0 : i32
    return %arg0, %arg1, %c0_i32, %c0_i32_0 : i32, i32, i32, i32
  }
}

</mosaic_0001>

<bundles_post_ra>
// kernel: mirror_conv_forward.1
= control target key start
LH: loop header
LB: loop body
LE: loop exit
PB: predicated region body
PF: predicated region fallthrough
CT: control target
= control target key end

     0   :  { %s1307_s12 = smov 0   ;;  %s1309_s13 = smov 0   ;;  %s1544_s0 = inlined_call_operand.vmem [shape: bf16[2,10,192,16], index: 0, kind: input, shape index: {}]   ;;  %s1545_s1 = inlined_call_operand.vmem [shape: bf16[3,3,16,16], index: 1, kind: input, shape index: {}]   ;;  %s1546_s2 = inlined_call_operand.vmem [shape: f32[1,16], index: 2, kind: input, shape index: {}]   ;;  %s1547_s3 = inlined_call_operand.vmem [shape: f32[2,8,160,16], index: 3, kind: output, shape index: {}]  }
   0x1   :  { %s1311_s14 = smov 0   ;;  %s1313_s15 = smov 0  }
   0x2   :  { %s1315_s16 = smov 0   ;;  %s1317_s17 = smov 0  }
   0x3   :  { %s1319_s18 = smov 0  }
   0x4 LB: > { %s25_s19 = sadd.s32 1, %s1273_s15  ;;  %s28_s20 = sadd.s32 1, %s1277_s16  ;;  %s1285_s18 = sphi %s1319_s18, %s13_s18   ;;  %s1281_s17 = sphi %s1317_s17, %s1553_s17   ;;  %s1277_s16 = sphi %s1315_s16, %s1552_s16   ;;  %s1273_s15 = sphi %s1313_s15, %s1551_s15   ;;  %s1269_s14 = sphi %s1311_s14, %s1550_s14   ;;  %s1265_s13 = sphi %s1309_s13, %s1549_s13   ;;  %s1261_s12 = sphi %s1307_s12, %s1548_s12  }
   0x5   : > { %p26_p0 = scmp.ge.s32.totalorder %s25_s19, 3  ;;  %p957_p1 = scmp.ge.s32.totalorder %s1285_s18, 1 }
   0x6   : > { %p178_p2 = scmp.lt.s32.totalorder %s1285_s18, 49  ;;  %s32_s21 = sadd.s32 1, %s1281_s17 }
   0x7   : > { %s1555_s19 = smov (%p26_p0, %s25_s19), 0  ;;  %s1557_s20 = smov (!%p26_p0, %s28_s20), %s1277_s16 }
   0x8   : > { %p179_p3 = pnand %p957_p1, %p178_p2  ;;  %p30_p4 = scmp.ge.s32.totalorder %s1557_s20, 8 }
   0x9   : > { %s216_s22 = sadd.s32 (!%p179_p3), %s1261_s12, %s1265_s13  ;;  %p217_p6 = scmp.lt.s32.totalorder (!%p179_p3), %s1269_s14, 1 }
   0xa   : > { %s1559_s20 = smov (%p30_p4, %s1557_s20), 0  ;;  %s1561_s21 = smov (!%p30_p4, %s32_s21), %s1281_s17 }
   0xb   : > { %p34_p5 = scmp.ge.s32.totalorder %s1561_s21, 2  ;;  %182 = sbr.rel (%p179_p3) target bundleno = 320 (0x140), region = 32 }
   0xc   : > { %p219_p7 = scmp.lt.s32.totalorder (!%p179_p3), %s216_s22, 9  ;;  %p227_p8 = scmp.lt.s32.totalorder (!%p179_p3), %s1261_s12, 2 }
   0xd   : > { %s1563_s21 = smov (%p34_p5, %s1561_s21), 0  ;;  %p234_p9 = scmp.lt.s32.totalorder (!%p179_p3), %s1265_s13, 7 }
   0xe   : > { %p961_p10 = scmp.ne.s32.totalorder (!%p179_p3), %s1261_s12, 0 }
  0x12   : > { %s1565_s14 = smov (!%p217_p6, %s1269_s14), 1  ;;  %s1567_s22 = smov (!%p219_p7, %s216_s22), 9 }
  0x13   : > { %s1156_s23 = smul.u32 240, %s1565_s14  ;;  %s1569_s13 = smov (!%p234_p9, %s1265_s13), 7  ;;  %v962_v0 = vld [vmem:[%s1546_s2] ss:$0 sm:$0xff] (!%p961_p10)  ;;  %vm253_vm0 = vcmask (!%p961_p10), 130048  }
  0x14   : > { %s1155_s24 = smul.u32 24, %s1567_s22 }
  0x15   : > { %s228_s25 = scalar_select %p227_p8, %s1261_s12, 2 }
  0x16   : > { %s223_s26 = sadd.s32 %s1156_s23, %s1155_s24  ;;  %s1159_s8 = smul.u32 160, %s1565_s14 }
  0x17   : > { %s958_s27 = sshll.u32 %s223_s26, 2  ;;  %s1157_s28 = smul.u32 24, %s228_s25 }
  0x18   : > { %s1361_s4 = scalar_lea.vmem %s1544_s0, %s958_s27  ;;  %s1158_s9 = smul.u32 20, %s1569_s13 }
  0x19   : > { %s1366_s7 = scalar_lea.vmem %s1545_s1, %s1157_s28  ;;  %245 = sbr.rel (%p961_p10) target bundleno = 39 (0x27), region = 36 }
  0x1a   : > { %s238_s10 = sadd.s32 %s1159_s8, %s1158_s9 }
  0x1b   : > { %s960_s11 = sshll.u32 %s238_s10, 3 }
  0x1c   : > { %s1372_s24 = scalar_lea.vmem %s1547_s3, %s960_s11 }
  0x1d   : > { %254 = vst.msk [vmem:[%s1372_s24] sm:$0xff] (!%p961_p10), %vm253_vm0, %v962_v0  ;;  %255 = vst.msk [vmem:[%s1372_s24 + $0x8] sm:$0xff] (!%p961_p10), %vm253_vm0, %v962_v0 }
  0x1e   : > { %256 = vst.msk [vmem:[%s1372_s24 + $0x10] sm:$0xff] (!%p961_p10), %vm253_vm0, %v962_v0  ;;  %257 = vst.msk [vmem:[%s1372_s24 + $0x18] sm:$0xff] (!%p961_p10), %vm253_vm0, %v962_v0 }
  0x1f   : > { %258 = vst.msk [vmem:[%s1372_s24 + $0x20] sm:$0xff] (!%p961_p10), %vm253_vm0, %v962_v0  ;;  %259 = vst.msk [vmem:[%s1372_s24 + $0x28] sm:$0xff] (!%p961_p10), %vm253_vm0, %v962_v0 }
  0x20   : > { %260 = vst.msk [vmem:[%s1372_s24 + $0x30] sm:$0xff] %vm253_vm0, %v962_v0  ;;  %261 = vst.msk [vmem:[%s1372_s24 + $0x38] sm:$0xff] %vm253_vm0, %v962_v0 }
  0x21   : > { %262 = vst.msk [vmem:[%s1372_s24 + $0x40] sm:$0xff] %vm253_vm0, %v962_v0  ;;  %263 = vst.msk [vmem:[%s1372_s24 + $0x48] sm:$0xff] %vm253_vm0, %v962_v0 }
  0x22   : > { %264 = vst.msk [vmem:[%s1372_s24 + $0x50] sm:$0xff] %vm253_vm0, %v962_v0  ;;  %265 = vst.msk [vmem:[%s1372_s24 + $0x58] sm:$0xff] %vm253_vm0, %v962_v0 }
  0x23   : > { %266 = vst.msk [vmem:[%s1372_s24 + $0x60] sm:$0xff] %vm253_vm0, %v962_v0  ;;  %267 = vst.msk [vmem:[%s1372_s24 + $0x68] sm:$0xff] %vm253_vm0, %v962_v0 }
  0x24   : > { %268 = vst.msk [vmem:[%s1372_s24 + $0x70] sm:$0xff] %vm253_vm0, %v962_v0  ;;  %269 = vst.msk [vmem:[%s1372_s24 + $0x78] sm:$0xff] %vm253_vm0, %v962_v0 }
  0x25   : > { %270 = vst.msk [vmem:[%s1372_s24 + $0x80] sm:$0xff] %vm253_vm0, %v962_v0  ;;  %271 = vst.msk [vmem:[%s1372_s24 + $0x88] sm:$0xff] %vm253_vm0, %v962_v0 }
  0x26   : > { %272 = vst.msk [vmem:[%s1372_s24 + $0x90] sm:$0xff] %vm253_vm0, %v962_v0  ;;  %273 = vst.msk [vmem:[%s1372_s24 + $0x98] sm:$0xff] %vm253_vm0, %v962_v0 }
  0x27 PF: > { %v1216_v1 = vld [vmem:[%s1366_s7 + $0x8] sm:$0xff]   ;;  %v1217_v2 = vld [vmem:[%s1366_s7] sm:$0xff]   ;;  %vm359_vm1 = vcmask 130048   ;;  %v1220_v5 = vld [vmem:[%s1361_s4 + $0x10] sm:$0xff]  }
  0x28   : > { %1047 = vmatprep.subr.bf16.mxu1 %v1216_v1  ;;  %v1218_v3 = vld [vmem:[%s1361_s4 + $0x8] sm:$0xff]   ;;  %1069 = vmatprep.subr.bf16.mxu0 %v1217_v2  ;;  %v1219_v4 = vld [vmem:[%s1361_s4] sm:$0xff]   ;;  %v1221_v6 = vld [vmem:[%s1366_s7 + $0x10] sm:$0xff]  }
  0x29   : > { %1048 = vmatpush3.bf16.msra.mxu1 %v1216_v1  ;;  %1070 = vmatpush3.bf16.msra.mxu0 %v1217_v2  ;;  %v1222_v7 = vld [vmem:[%s1361_s4 + $0x18] sm:$0xff]   ;;  %v1223_v8 = vld [vmem:[%s1361_s4 + $0x20] sm:$0xff]   ;;  %v1224_v9 = vld [vmem:[%s1361_s4 + $0x28] sm:$0xff]  }
  0x2a   : > { %1049 = vmatprep.mubr.msk.bf16.mxu1 %vm359_vm1, %v1218_v3  ;;  %1071 = vmatprep.mubr.msk.bf16.mxu0 %vm359_vm1, %v1219_v4  ;;  %v1225_v10 = vld [vmem:[%s1361_s4 + $0x30] sm:$0xff]   ;;  %v1226_v11 = vld [vmem:[%s1361_s4 + $0x38] sm:$0xff]   ;;  %v1227_v12 = vld [vmem:[%s1361_s4 + $0x40] sm:$0xff]  }
  0x2b   : > { %1113 = vmatprep.subr.bf16.mxu1 %v1217_v2  ;;  %1091 = vmatprep.subr.bf16.mxu0 %v1221_v6  ;;  %v1228_v13 = vld [vmem:[%s1361_s4 + $0x48] sm:$0xff]   ;;  %v1229_v14 = vld [vmem:[%s1361_s4 + $0x50] sm:$0xff]   ;;  %v1230_v15 = vld [vmem:[%s1361_s4 + $0x58] sm:$0xff]  }
  0x2c   : > { %1050 = vmatmul.mubr.msk.bf16.vlgmr.msra.gmra.mrb[0].mxu1 %vm359_vm1, %v1220_v5  ;;  %1072 = vmatmul.mubr.msk.bf16.vlgmr.msra.gmra.mrb[0].mxu0 %vm359_vm1, %v1218_v3  ;;  %v782_v29 = vld [vmem:[%s1372_s24 + $0x10] sm:$0xff]  ;;  %v780_v32 = vld [vmem:[%s1372_s24] sm:$0xff]  ;;  %v783_v35 = vld [vmem:[%s1372_s24 + $0x18] sm:$0xff] }
  0x2d   : > { %1092 = vmatpush3.bf16.msra.mxu0 %v1221_v6  ;;  %1053 = vmatprep.mubr.msk.bf16.mxu1 %vm359_vm1, %v1222_v7  ;;  %v781_v39 = vld [vmem:[%s1372_s24 + $0x8] sm:$0xff]  ;;  %v786_v45 = vld [vmem:[%s1372_s24 + $0x30] sm:$0xff]  ;;  %v784_v48 = vld [vmem:[%s1372_s24 + $0x20] sm:$0xff] }
  0x2e   : > { %1075 = vmatprep.mubr.msk.bf16.mxu0 %vm359_vm1, %v1220_v5  ;;  %1114 = vmatpush3.bf16.msra.mxu1 %v1217_v2  ;;  %v787_v51 = vld [vmem:[%s1372_s24 + $0x38] sm:$0xff]  ;;  %v785_v55 = vld [vmem:[%s1372_s24 + $0x28] sm:$0xff]  ;;  %v790_v62 = vld [vmem:[%s1372_s24 + $0x50] sm:$0xff] }
  0x2f   : > { %v788_v2 = vld [vmem:[%s1372_s24 + $0x40] sm:$0xff]  ;;  %v791_v6 = vld [vmem:[%s1372_s24 + $0x58] sm:$0xff] }
  0x34   : > { %1054 = vmatmul.mubr.msk.bf16.gmra.mrb[4].mxu1 %vm359_vm1, %v1223_v8  ;;  %1076 = vmatmul.mubr.msk.bf16.gmra.mrb[4].mxu0 %vm359_vm1, %v1222_v7 }
  0x35   : > { %1057 = vmatprep.mubr.msk.bf16.mxu1 %vm359_vm1, %v1224_v9  ;;  %1079 = vmatprep.mubr.msk.bf16.mxu0 %vm359_vm1, %v1223_v8 }
  0x3c   : > { %1058 = vmatmul.mubr.msk.bf16.gmra.mrb[8].mxu1 %vm359_vm1, %v1225_v10  ;;  %1080 = vmatmul.mubr.msk.bf16.gmra.mrb[8].mxu0 %vm359_vm1, %v1224_v9 }
  0x3d   : > { %1061 = vmatprep.mubr.msk.bf16.mxu1 %vm359_vm1, %v1226_v11  ;;  %1093 = vmatprep.mubr.msk.bf16.mxu0 %vm359_vm1, %v1220_v5 }
  0x44   : > { %1062 = vmatmul.mubr.msk.bf16.gmra.mrb[12].mxu1 %vm359_vm1, %v1227_v12  ;;  %1094 = vmatmul.mubr.msk.bf16.vlgmr.msra.gmra.mrb[0].mxu0 %vm359_vm1, %v1222_v7 }
  0x45   : > { %1065 = vmatprep.mubr.msk.bf16.mxu1 %vm359_vm1, %v1228_v13  ;;  %1097 = vmatprep.mubr.msk.bf16.mxu0 %vm359_vm1, %v1223_v8 }
  0x4c   : > { %1066 = vmatmul.mubr.msk.bf16.gmra.mrb[16].mxu1 %vm359_vm1, %v1229_v14  ;;  %1098 = vmatmul.mubr.msk.bf16.gmra.mrb[4].mxu0 %vm359_vm1, %v1224_v9 }
  0x4d   : > { %1083 = vmatprep.mubr.msk.bf16.mxu1 %vm359_vm1, %v1225_v10  ;;  %1101 = vmatprep.mubr.msk.bf16.mxu0 %vm359_vm1, %v1225_v10 }
  0x54   : > { %1084 = vmatmul.mubr.msk.bf16.vlgmr.msra.gmra.mrb[12].mxu1 %vm359_vm1, %v1226_v11  ;;  %1102 = vmatmul.mubr.msk.bf16.gmra.mrb[8].mxu0 %vm359_vm1, %v1226_v11  ;;  %v789_v11 = vld [vmem:[%s1372_s24 + $0x48] sm:$0xff] }
  0x55   : > { %1087 = vmatprep.mubr.msk.bf16.mxu1 %vm359_vm1, %v1227_v12  ;;  %1105 = vmatprep.mubr.msk.bf16.mxu0 %vm359_vm1, %v1227_v12 }
  0x5c   : > { %1088 = vmatmul.mubr.msk.bf16.gmra.mrb[16].mxu1 %vm359_vm1, %v1228_v13  ;;  %1106 = vmatmul.mubr.msk.bf16.gmra.mrb[12].mxu0 %vm359_vm1, %v1228_v13 }
  0x5d   : > { %1109 = vmatprep.mubr.msk.bf16.mxu0 %vm359_vm1, %v1229_v14 }
  0x64   : > { %1110 = vmatmul.mubr.msk.bf16.gmra.mrb[16].mxu0 %vm359_vm1, %v1230_v15 }
  0xff   : > { %v1051_v16 = vpop.f32.mrb[0].mxu1 }
 0x100   : > { %v424_v17 = vpop.f32.mrb[1].mxu1 }
 0x101   : > { %v1052_v18 = vpop.f32.mrb[2].mxu1 }
 0x102   : > { %v427_v19 = vpop.f32.mrb[3].mxu1 }
 0x107   : > { %v1055_v20 = vpop.f32.mrb[4].mxu1 }
 0x108   : > { %v440_v21 = vpop.f32.mrb[5].mxu1 }
 0x109   : > { %v1056_v22 = vpop.f32.mrb[6].mxu1 }
 0x10a   : > { %v443_v23 = vpop.f32.mrb[7].mxu1 }
 0x10f   : > { %v1059_v24 = vpop.f32.mrb[8].mxu1 }
 0x110   : > { %v456_v25 = vpop.f32.mrb[9].mxu1 }
 0x111   : > { %v1060_v26 = vpop.f32.mrb[10].mxu1 }
 0x112   : > { %v459_v27 = vpop.f32.mrb[11].mxu1 }
 0x117   : > { %v1095_v28 = vpop.f32.mrb[0].mxu0 }
 0x118   : > { %v1115_v30 = vadd.f32 %v1095_v28, %v1051_v16  ;;  %v681_v31 = vpop.f32.mrb[1].mxu0 }
 0x119   : > { %v1116_v33 = vadd.f32 %v681_v31, %v424_v17  ;;  %v1096_v34 = vpop.f32.mrb[2].mxu0  ;;  %v793_v31 = vld [vmem:[%s1372_s24 + $0x68] sm:$0xff] }
 0x11a   : > { %v802_v36 = vadd.f32 %v1115_v30, %v782_v29  ;;  %v1117_v37 = vadd.f32 %v1096_v34, %v1052_v18  ;;  %v684_v38 = vpop.f32.mrb[3].mxu0  ;;  %v794_v18 = vld [vmem:[%s1372_s24 + $0x70] sm:$0xff] }
 0x11b   : > { %v800_v40 = vadd.f32 %v1116_v33, %v780_v32  ;;  %v1118_v41 = vadd.f32 %v684_v38, %v427_v19 }
 0x11c   : > { %822 = vst.msk [vmem:[%s1372_s24 + $0x10] sm:$0xff] %vm359_vm1, %v802_v36  ;;  %v803_v42 = vadd.f32 %v1117_v37, %v783_v35  ;;  %v798_v37 = vld [vmem:[%s1372_s24 + $0x90] sm:$0xff] }
 0x11d   : > { %820 = vst.msk [vmem:[%s1372_s24] sm:$0xff] %vm359_vm1, %v800_v40  ;;  %v801_v43 = vadd.f32 %v1118_v41, %v781_v39  ;;  %v796_v40 = vld [vmem:[%s1372_s24 + $0x80] sm:$0xff] }
 0x11e   : > { %823 = vst.msk [vmem:[%s1372_s24 + $0x18] sm:$0xff] %vm359_vm1, %v803_v42 }
 0x11f   : > { %821 = vst.msk [vmem:[%s1372_s24 + $0x8] sm:$0xff] %vm359_vm1, %v801_v43  ;;  %v1099_v44 = vpop.f32.mrb[4].mxu0  ;;  %v799_v43 = vld [vmem:[%s1372_s24 + $0x98] sm:$0xff] }
 0x120   : > { %v1119_v46 = vadd.f32 %v1099_v44, %v1055_v20  ;;  %v697_v47 = vpop.f32.mrb[5].mxu0 }
 0x121   : > { %v1120_v49 = vadd.f32 %v697_v47, %v440_v21  ;;  %v1100_v50 = vpop.f32.mrb[6].mxu0  ;;  %v797_v47 = vld [vmem:[%s1372_s24 + $0x88] sm:$0xff] }
 0x122   : > { %v806_v52 = vadd.f32 %v1119_v46, %v786_v45  ;;  %v1121_v53 = vadd.f32 %v1100_v50, %v1056_v22  ;;  %v700_v54 = vpop.f32.mrb[7].mxu0  ;;  %v792_v22 = vld [vmem:[%s1372_s24 + $0x60] sm:$0xff] }
 0x123   : > { %v804_v56 = vadd.f32 %v1120_v49, %v784_v48  ;;  %v1122_v57 = vadd.f32 %v700_v54, %v443_v23 }
 0x124   : > { %826 = vst.msk [vmem:[%s1372_s24 + $0x30] sm:$0xff] %vm359_vm1, %v806_v52  ;;  %v807_v58 = vadd.f32 %v1121_v53, %v787_v51 }
 0x125   : > { %824 = vst.msk [vmem:[%s1372_s24 + $0x20] sm:$0xff] %vm359_vm1, %v804_v56  ;;  %v805_v59 = vadd.f32 %v1122_v57, %v785_v55 }
 0x126   : > { %827 = vst.msk [vmem:[%s1372_s24 + $0x38] sm:$0xff] %vm359_vm1, %v807_v58 }
 0x127   : > { %v1085_v60 = vpop.f32.mrb[12].mxu1  ;;  %825 = vst.msk [vmem:[%s1372_s24 + $0x28] sm:$0xff] %vm359_vm1, %v805_v59  ;;  %v1103_v61 = vpop.f32.mrb[8].mxu0 }
 0x128   : > { %v599_v63 = vpop.f32.mrb[13].mxu1  ;;  %v1123_v0 = vadd.f32 %v1103_v61, %v1059_v24  ;;  %v713_v1 = vpop.f32.mrb[9].mxu0 }
 0x129   : > { %v1086_v3 = vpop.f32.mrb[14].mxu1  ;;  %v1124_v4 = vadd.f32 %v713_v1, %v456_v25  ;;  %v1104_v5 = vpop.f32.mrb[10].mxu0 }
 0x12a   : > { %v602_v7 = vpop.f32.mrb[15].mxu1  ;;  %v810_v8 = vadd.f32 %v1123_v0, %v790_v62  ;;  %v1125_v9 = vadd.f32 %v1104_v5, %v1060_v26  ;;  %v716_v10 = vpop.f32.mrb[11].mxu0  ;;  %v795_v26 = vld [vmem:[%s1372_s24 + $0x78] sm:$0xff] }
 0x12b   : > { %v808_v12 = vadd.f32 %v1124_v4, %v788_v2  ;;  %v1126_v13 = vadd.f32 %v716_v10, %v459_v27 }
 0x12c   : > { %830 = vst.msk [vmem:[%s1372_s24 + $0x50] sm:$0xff] %vm359_vm1, %v810_v8  ;;  %v811_v14 = vadd.f32 %v1125_v9, %v791_v6 }
 0x12d   : > { %828 = vst.msk [vmem:[%s1372_s24 + $0x40] sm:$0xff] %vm359_vm1, %v808_v12  ;;  %v809_v15 = vadd.f32 %v1126_v13, %v789_v11 }
 0x12e   : > { %831 = vst.msk [vmem:[%s1372_s24 + $0x58] sm:$0xff] %vm359_vm1, %v811_v14 }
 0x12f   : > { %v1089_v16 = vpop.f32.mrb[16].mxu1  ;;  %829 = vst.msk [vmem:[%s1372_s24 + $0x48] sm:$0xff] %vm359_vm1, %v809_v15  ;;  %v1107_v17 = vpop.f32.mrb[12].mxu0 }
 0x130   : > { %v615_v19 = vpop.f32.mrb[17].mxu1  ;;  %v1127_v20 = vadd.f32 %v1107_v17, %v1085_v60  ;;  %v729_v21 = vpop.f32.mrb[13].mxu0 }
 0x131   : > { %v1090_v23 = vpop.f32.mrb[18].mxu1  ;;  %v1128_v24 = vadd.f32 %v729_v21, %v599_v63  ;;  %v1108_v25 = vpop.f32.mrb[14].mxu0 }
 0x132   : > { %v618_v27 = vpop.f32.mrb[19].mxu1  ;;  %v814_v28 = vadd.f32 %v1127_v20, %v794_v18  ;;  %v1129_v29 = vadd.f32 %v1108_v25, %v1086_v3  ;;  %v732_v30 = vpop.f32.mrb[15].mxu0 }
 0x133   : > { %v812_v32 = vadd.f32 %v1128_v24, %v792_v22  ;;  %v1130_v33 = vadd.f32 %v732_v30, %v602_v7 }
 0x134   : > { %834 = vst.msk [vmem:[%s1372_s24 + $0x70] sm:$0xff] %vm359_vm1, %v814_v28  ;;  %v815_v34 = vadd.f32 %v1129_v29, %v795_v26 }
 0x135   : > { %832 = vst.msk [vmem:[%s1372_s24 + $0x60] sm:$0xff] %vm359_vm1, %v812_v32  ;;  %v813_v35 = vadd.f32 %v1130_v33, %v793_v31 }
 0x136   : > { %835 = vst.msk [vmem:[%s1372_s24 + $0x78] sm:$0xff] %vm359_vm1, %v815_v34 }
 0x137   : > { %833 = vst.msk [vmem:[%s1372_s24 + $0x68] sm:$0xff] %vm359_vm1, %v813_v35  ;;  %v1111_v36 = vpop.f32.mrb[16].mxu0 }
 0x138   : > { %v1131_v38 = vadd.f32 %v1111_v36, %v1089_v16  ;;  %v745_v39 = vpop.f32.mrb[17].mxu0 }
 0x139   : > { %v1132_v41 = vadd.f32 %v745_v39, %v615_v19  ;;  %v1112_v42 = vpop.f32.mrb[18].mxu0 }
 0x13a   : > { %v818_v44 = vadd.f32 %v1131_v38, %v798_v37  ;;  %v1133_v45 = vadd.f32 %v1112_v42, %v1090_v23  ;;  %v748_v46 = vpop.f32.mrb[19].mxu0 }
 0x13b   : > { %v816_v48 = vadd.f32 %v1132_v41, %v796_v40  ;;  %v1134_v49 = vadd.f32 %v748_v46, %v618_v27 }
 0x13c   : > { %838 = vst.msk [vmem:[%s1372_s24 + $0x90] sm:$0xff] %vm359_vm1, %v818_v44  ;;  %v819_v50 = vadd.f32 %v1133_v45, %v799_v43 }
 0x13d   : > { %836 = vst.msk [vmem:[%s1372_s24 + $0x80] sm:$0xff] %vm359_vm1, %v816_v48  ;;  %v817_v51 = vadd.f32 %v1134_v49, %v797_v47 }
 0x13e   : > { %839 = vst.msk [vmem:[%s1372_s24 + $0x98] sm:$0xff] %vm359_vm1, %v819_v50 }
 0x13f   : > { %837 = vst.msk [vmem:[%s1372_s24 + $0x88] sm:$0xff] %vm359_vm1, %v817_v51 }
 0x140 PF: > { %s13_s18 = sadd.s32 1, %s1285_s18   ;;  %s1548_s12 = smov %s1273_s15 }
 0x141   : > { %p10_p11 = scmp.ge.s32.totalorder %s13_s18, 50   ;;  %s1549_s13 = smov %s1277_s16 }
 0x142   : > { %s1550_s14 = smov %s1281_s17  ;;  %s1551_s15 = smov %s1555_s19 }
 0x143   : > { %s1552_s16 = smov %s1559_s20  ;;  %s1553_s17 = smov %s1563_s21 }
 0x144   :  { %12 = sbr.rel (!%p10_p11) target bundleno = 4 (0x4), region = 71 }

</bundles_post_ra>
